<compile_context>
chip_gen: v7x
topology: tpu7x:2x2x1
jax: 0.10.0
libtpu: 0.0.40
codegen_flags: <defaults>
</compile_context>

<pallas_src>
import jax
import jax.numpy as jnp
from jax.experimental import pallas as pl
from jax.experimental.pallas import tpu as pltpu

EPS = 1e-5
NEG_SLOPE = 0.01  # PyTorch nn.LeakyReLU default


def conv_bn_lrelu_pallas(x_nchw, weight, bias, gamma, beta, *, tile_m=256):
    """Conv2d(k=3, stride=1, pad=1, bias) + BatchNorm2d (training) + LeakyReLU.

    x_nchw: [N, C_in, H, W]; weight: [C_out, C_in, 3, 3] (PyTorch layout).
    `bias` is accepted for API parity but is NOT used: it cancels exactly in
    training-mode BatchNorm.  For production sizes use tile_m >= 512.
    """
    del bias  # cancels under batch-norm: (y+b) - mean(y+b) == y - mean(y)

    N, C_in, H, W = x_nchw.shape
    C_out, _, kH, kW = weight.shape
    assert (kH, kW) == (3, 3)
    assert tile_m % 128 == 0

    Hp, Wp = H + 2, W + 2
    Mp = N * Hp * Wp                      # flattened padded-grid length
    M_valid = N * H * W                   # positions BN statistics average over
    T = (Mp + tile_m - 1) // tile_m       # number of M tiles
    ovh = ((2 * Wp + 2 + 127) // 128) * 128   # tap-shift overhang, 128-aligned
    L = T * tile_m + ovh

    # --- wrapper-side layout plumbing (reads the input once, no im2col) ------
    # Channels-first, zero-padded, flattened: Xf[c, n*Hp*Wp + r*Wp + s].
    xp = jnp.pad(x_nchw, ((0, 0), (0, 0), (1, 1), (1, 1)))
    Xf = xp.transpose(1, 0, 2, 3).reshape(C_in, Mp)
    Xf = jnp.pad(Xf, ((0, 0), (0, L - Mp)))

    # Overlapping per-tile windows (~(tile_m+ovh)/tile_m of the input, vs 9x
    # for im2col): Xw[t] = Xf[:, t*tile_m : t*tile_m + tile_m + ovh].
    Xw = jnp.stack(
        [jax.lax.slice(Xf, (0, t * tile_m), (C_in, t * tile_m + tile_m + ovh))
         for t in range(T)], axis=0)                      # [T, C_in, tile_m+ovh]

    # Conv taps: tap k = kh*3 + kw -> [C_out, C_in]; flat shift = kh*Wp + kw.
    w_taps = weight.transpose(2, 3, 0, 1).reshape(kH * kW, C_out, C_in)
    tap_offsets = tuple(kh * Wp + kw for kh in range(kH) for kw in range(kW))

    # Validity mask over the padded grid (1.0 where the position is a real
    # conv output, 0.0 on padding rows/cols and the tail).
    m_idx = jnp.arange(T * tile_m, dtype=jnp.int32)
    rem = m_idx % (Hp * Wp)
    valid = (m_idx < Mp) & (rem // Wp < H) & (rem % Wp < W)
    mask = valid.astype(jnp.float32).reshape(1, T * tile_m)

    g_col = gamma.reshape(C_out, 1).astype(jnp.float32)
    b_col = beta.reshape(C_out, 1).astype(jnp.float32)

    inv_m = 1.0 / float(M_valid)

    # --- kernel ---------------------------------------------------------------
    def kernel(xw_ref, w_ref, mask_ref, g_ref, bta_ref, o_ref,
               sum_ref, sq_ref, scale_ref, shift_ref):
        phase = pl.program_id(0)          # 0: conv + stats, 1: conv + normalize
        t = pl.program_id(1)

        # Conv as 9 shifted, accumulated matmuls over the resident window.
        xwin = xw_ref[0]                                   # [C_in, tile_m+ovh]
        y = None
        for k, off in enumerate(tap_offsets):
            xs = xwin[:, off:off + tile_m]                 # static lane-offset slice
            contrib = jnp.dot(w_ref[k], xs,
                              preferred_element_type=jnp.float32)
            y = contrib if y is None else y + contrib      # [C_out, tile_m]

        @pl.when((phase == 0) & (t == 0))
        def _init():
            sum_ref[...] = jnp.zeros_like(sum_ref)
            sq_ref[...] = jnp.zeros_like(sq_ref)

        @pl.when(phase == 0)
        def _stats():
            ym = y * mask_ref[...]
            sum_ref[...] += jnp.sum(ym, axis=1, keepdims=True)
            sq_ref[...] += jnp.sum(ym * y, axis=1, keepdims=True)

        @pl.when((phase == 1) & (t == 0))
        def _fold_bn():                                    # once per call
            mean = sum_ref[...] * inv_m                    # [C_out, 1]
            var = sq_ref[...] * inv_m - mean * mean        # biased (training BN)
            scale = g_ref[...] * jax.lax.rsqrt(var + EPS)
            scale_ref[...] = scale
            shift_ref[...] = bta_ref[...] - mean * scale

        @pl.when(phase == 1)
        def _normalize():
            z = y * scale_ref[...] + shift_ref[...]
            # Fused LeakyReLU (matches nn.Sequential(Conv, BN, LeakyReLU)).
            o_ref[...] = jnp.where(z > 0, z, NEG_SLOPE * z)  # lane-dense store

    grid = (2, T)
    win = tile_m + ovh

    out_flat = pl.pallas_call(
        kernel,
        out_shape=jax.ShapeDtypeStruct((C_out, (T + 1) * tile_m), jnp.float32),
        grid_spec=pltpu.PrefetchScalarGridSpec(
            num_scalar_prefetch=0,
            grid=grid,
            in_specs=[
                pl.BlockSpec((1, C_in, win), lambda p, t: (t, 0, 0)),      # Xw
                pl.BlockSpec((kH * kW, C_out, C_in), lambda p, t: (0, 0, 0)),
                pl.BlockSpec((1, tile_m), lambda p, t: (0, t)),            # mask
                pl.BlockSpec((C_out, 1), lambda p, t: (0, 0)),             # gamma
                pl.BlockSpec((C_out, 1), lambda p, t: (0, 0)),             # beta
            ],
            # Phase 0 writes nothing: point it at a dummy trailing block (kept
            # resident, no per-tile writeback); phase 1 writes the real tiles.
            out_specs=pl.BlockSpec(
                (C_out, tile_m), lambda p, t: (0, jnp.where(p == 0, T, t))),
            scratch_shapes=[pltpu.VMEM((C_out, 1), jnp.float32),   # sum(y)
                            pltpu.VMEM((C_out, 1), jnp.float32),   # sum(y*y)
                            pltpu.VMEM((C_out, 1), jnp.float32),   # BN scale
                            pltpu.VMEM((C_out, 1), jnp.float32)],  # BN shift
        ),
        compiler_params=pltpu.CompilerParams(
            dimension_semantics=("arbitrary", "arbitrary"),
            vmem_limit_bytes=32 * 1024 * 1024,
        ),
        cost_estimate=pl.CostEstimate(
            flops=2 * (T * tile_m) * (kH * kW) * 2 * C_out * C_in,
            transcendentals=C_out,
            bytes_accessed=(2 * Xw.size + w_taps.size + 2 * mask.size
                            + C_out * (T + 1) * tile_m + 2 * C_out) * 4,
        ),
    )(Xw, w_taps, mask, g_col, b_col)

    # Crop the padded grid / tail and return to NCHW.
    out = out_flat[:, :Mp].reshape(C_out, N, Hp, Wp)[:, :, :H, :W]
    return out.transpose(1, 0, 2, 3)


def conv_bn_lrelu_reference(x_nchw, weight, bias, gamma, beta):
    """Plain-JAX reference: Conv2d(pad=1, bias) + BatchNorm2d (training) + LeakyReLU."""
    y = jax.lax.conv_general_dilated(
        x_nchw, weight, window_strides=(1, 1), padding=((1, 1), (1, 1)),
        dimension_numbers=("NCHW", "OIHW", "NCHW"))
    y = y + bias.reshape(1, -1, 1, 1)
    mean = jnp.mean(y, axis=(0, 2, 3), keepdims=True)
    var = jnp.mean((y - mean) ** 2, axis=(0, 2, 3), keepdims=True)
    z = (gamma.reshape(1, -1, 1, 1) * (y - mean)
         * jax.lax.rsqrt(var + EPS) + beta.reshape(1, -1, 1, 1))
    return jnp.where(z > 0, z, NEG_SLOPE * z)


if __name__ == "__main__":
    key = jax.random.PRNGKey(0)
    k_x, k_w, k_b, k_g, k_be = jax.random.split(key, 5)

    N, C_in, H, W = 2, 4, 16, 16
    C_out = 8

    x = jax.random.normal(k_x, (N, C_in, H, W), dtype=jnp.float32)
    # Deterministic synthetic parameters (not a checkpoint load).
    weight = jax.random.normal(k_w, (C_out, C_in, 3, 3), dtype=jnp.float32) * 0.1
    bias = jax.random.normal(k_b, (C_out,), dtype=jnp.float32) * 0.1
    gamma = 1.0 + 0.1 * jax.random.normal(k_g, (C_out,), dtype=jnp.float32)
    beta = 0.1 * jax.random.normal(k_be, (C_out,), dtype=jnp.float32)

    out = conv_bn_lrelu_pallas(x, weight, bias, gamma, beta)
    out = jax.block_until_ready(out)

    ref = conv_bn_lrelu_reference(x, weight, bias, gamma, beta)
    assert out.shape == (N, C_out, H, W)
    assert jnp.allclose(out, ref, atol=2e-4, rtol=2e-4)

    print("KERNEL_OK")
</pallas_src>

<mosaic_0001>
module attributes {stable_mosaic.version = 11 : i64} {
  func.func @kernel(%arg0: i32, %arg1: i32, %arg2: memref<1x4x384xf32, #tpu.memory_space<vmem>>, %arg3: memref<9x8x4xf32, #tpu.memory_space<vmem>>, %arg4: memref<1x256xf32, #tpu.memory_space<vmem>>, %arg5: memref<8x1xf32, #tpu.memory_space<vmem>>, %arg6: memref<8x1xf32, #tpu.memory_space<vmem>>, %arg7: memref<8x256xf32, #tpu.memory_space<vmem>>, %arg8: memref<8x1xf32, #tpu.memory_space<vmem>>, %arg9: memref<8x1xf32, #tpu.memory_space<vmem>>, %arg10: memref<8x1xf32, #tpu.memory_space<vmem>>, %arg11: memref<8x1xf32, #tpu.memory_space<vmem>>) attributes {dimension_semantics = [#tpu.dimension_semantics<arbitrary>, #tpu.dimension_semantics<arbitrary>], iteration_bounds = array<i64: 2, 3>, scalar_prefetch = 0 : i64, scratch_operands = 4 : i64, tpu.core_type = #tpu.core_type<tc>, window_params = [{transform_indices = @transform_0, window_bounds = array<i64: 1, 4, 384>}, {pipeline_mode = #tpu.pipeline_mode<synchronous>, transform_indices = @transform_1, window_bounds = array<i64: 9, 8, 4>}, {transform_indices = @transform_2, window_bounds = array<i64: 1, 256>}, {pipeline_mode = #tpu.pipeline_mode<synchronous>, transform_indices = @transform_3, window_bounds = array<i64: 8, 1>}, {pipeline_mode = #tpu.pipeline_mode<synchronous>, transform_indices = @transform_4, window_bounds = array<i64: 8, 1>}, {transform_indices = @transform_5, window_bounds = array<i64: 8, 256>}]} {
    %c0 = arith.constant 0 : index
    %c0_0 = arith.constant 0 : index
    %c0_1 = arith.constant 0 : index
    %0 = vector.load %arg2[%c0, %c0_0, %c0_1] : memref<1x4x384xf32, #tpu.memory_space<vmem>>, vector<1x4x384xf32>
    %1 = vector.shape_cast %0 : vector<1x4x384xf32> to vector<4x384xf32>
    %2 = vector.extract_strided_slice %1 {offsets = [0, 0], sizes = [4, 256], strides = [1, 1]} : vector<4x384xf32> to vector<4x256xf32>
    %c0_2 = arith.constant 0 : index
    %c0_3 = arith.constant 0 : index
    %c0_4 = arith.constant 0 : index
    %3 = vector.load %arg3[%c0_2, %c0_3, %c0_4] : memref<9x8x4xf32, #tpu.memory_space<vmem>>, vector<1x8x4xf32>
    %4 = vector.shape_cast %3 : vector<1x8x4xf32> to vector<8x4xf32>
    %cst = arith.constant dense<0.000000e+00> : vector<8x256xf32>
    %5 = tpu.matmul %4, %2, %cst {dimension_numbers = #tpu.dot_dimension_numbers<[1], [0], [0], [1], [0, 0, 1, 1], [], []>} : vector<8x4xf32>, vector<4x256xf32>, vector<8x256xf32> -> vector<8x256xf32>
    %6 = vector.extract_strided_slice %1 {offsets = [0, 1], sizes = [4, 256], strides = [1, 1]} : vector<4x384xf32> to vector<4x256xf32>
    %c1 = arith.constant 1 : index
    %c0_5 = arith.constant 0 : index
    %c0_6 = arith.constant 0 : index
    %7 = vector.load %arg3[%c1, %c0_5, %c0_6] : memref<9x8x4xf32, #tpu.memory_space<vmem>>, vector<1x8x4xf32>
    %8 = vector.shape_cast %7 : vector<1x8x4xf32> to vector<8x4xf32>
    %cst_7 = arith.constant dense<0.000000e+00> : vector<8x256xf32>
    %9 = tpu.matmul %8, %6, %cst_7 {dimension_numbers = #tpu.dot_dimension_numbers<[1], [0], [0], [1], [0, 0, 1, 1], [], []>} : vector<8x4xf32>, vector<4x256xf32>, vector<8x256xf32> -> vector<8x256xf32>
    %10 = arith.addf %5, %9 : vector<8x256xf32>
    %11 = vector.extract_strided_slice %1 {offsets = [0, 2], sizes = [4, 256], strides = [1, 1]} : vector<4x384xf32> to vector<4x256xf32>
    %c2 = arith.constant 2 : index
    %c0_8 = arith.constant 0 : index
    %c0_9 = arith.constant 0 : index
    %12 = vector.load %arg3[%c2, %c0_8, %c0_9] : memref<9x8x4xf32, #tpu.memory_space<vmem>>, vector<1x8x4xf32>
    %13 = vector.shape_cast %12 : vector<1x8x4xf32> to vector<8x4xf32>
    %cst_10 = arith.constant dense<0.000000e+00> : vector<8x256xf32>
    %14 = tpu.matmul %13, %11, %cst_10 {dimension_numbers = #tpu.dot_dimension_numbers<[1], [0], [0], [1], [0, 0, 1, 1], [], []>} : vector<8x4xf32>, vector<4x256xf32>, vector<8x256xf32> -> vector<8x256xf32>
    %15 = arith.addf %10, %14 : vector<8x256xf32>
    %16 = vector.extract_strided_slice %1 {offsets = [0, 18], sizes = [4, 256], strides = [1, 1]} : vector<4x384xf32> to vector<4x256xf32>
    %c3 = arith.constant 3 : index
    %c0_11 = arith.constant 0 : index
    %c0_12 = arith.constant 0 : index
    %17 = vector.load %arg3[%c3, %c0_11, %c0_12] : memref<9x8x4xf32, #tpu.memory_space<vmem>>, vector<1x8x4xf32>
    %18 = vector.shape_cast %17 : vector<1x8x4xf32> to vector<8x4xf32>
    %cst_13 = arith.constant dense<0.000000e+00> : vector<8x256xf32>
    %19 = tpu.matmul %18, %16, %cst_13 {dimension_numbers = #tpu.dot_dimension_numbers<[1], [0], [0], [1], [0, 0, 1, 1], [], []>} : vector<8x4xf32>, vector<4x256xf32>, vector<8x256xf32> -> vector<8x256xf32>
    %20 = arith.addf %15, %19 : vector<8x256xf32>
    %21 = vector.extract_strided_slice %1 {offsets = [0, 19], sizes = [4, 256], strides = [1, 1]} : vector<4x384xf32> to vector<4x256xf32>
    %c4 = arith.constant 4 : index
    %c0_14 = arith.constant 0 : index
    %c0_15 = arith.constant 0 : index
    %22 = vector.load %arg3[%c4, %c0_14, %c0_15] : memref<9x8x4xf32, #tpu.memory_space<vmem>>, vector<1x8x4xf32>
    %23 = vector.shape_cast %22 : vector<1x8x4xf32> to vector<8x4xf32>
    %cst_16 = arith.constant dense<0.000000e+00> : vector<8x256xf32>
    %24 = tpu.matmul %23, %21, %cst_16 {dimension_numbers = #tpu.dot_dimension_numbers<[1], [0], [0], [1], [0, 0, 1, 1], [], []>} : vector<8x4xf32>, vector<4x256xf32>, vector<8x256xf32> -> vector<8x256xf32>
    %25 = arith.addf %20, %24 : vector<8x256xf32>
    %26 = vector.extract_strided_slice %1 {offsets = [0, 20], sizes = [4, 256], strides = [1, 1]} : vector<4x384xf32> to vector<4x256xf32>
    %c5 = arith.constant 5 : index
    %c0_17 = arith.constant 0 : index
    %c0_18 = arith.constant 0 : index
    %27 = vector.load %arg3[%c5, %c0_17, %c0_18] : memref<9x8x4xf32, #tpu.memory_space<vmem>>, vector<1x8x4xf32>
    %28 = vector.shape_cast %27 : vector<1x8x4xf32> to vector<8x4xf32>
    %cst_19 = arith.constant dense<0.000000e+00> : vector<8x256xf32>
    %29 = tpu.matmul %28, %26, %cst_19 {dimension_numbers = #tpu.dot_dimension_numbers<[1], [0], [0], [1], [0, 0, 1, 1], [], []>} : vector<8x4xf32>, vector<4x256xf32>, vector<8x256xf32> -> vector<8x256xf32>
    %30 = arith.addf %25, %29 : vector<8x256xf32>
    %31 = vector.extract_strided_slice %1 {offsets = [0, 36], sizes = [4, 256], strides = [1, 1]} : vector<4x384xf32> to vector<4x256xf32>
    %c6 = arith.constant 6 : index
    %c0_20 = arith.constant 0 : index
    %c0_21 = arith.constant 0 : index
    %32 = vector.load %arg3[%c6, %c0_20, %c0_21] : memref<9x8x4xf32, #tpu.memory_space<vmem>>, vector<1x8x4xf32>
    %33 = vector.shape_cast %32 : vector<1x8x4xf32> to vector<8x4xf32>
    %cst_22 = arith.constant dense<0.000000e+00> : vector<8x256xf32>
    %34 = tpu.matmul %33, %31, %cst_22 {dimension_numbers = #tpu.dot_dimension_numbers<[1], [0], [0], [1], [0, 0, 1, 1], [], []>} : vector<8x4xf32>, vector<4x256xf32>, vector<8x256xf32> -> vector<8x256xf32>
    %35 = arith.addf %30, %34 : vector<8x256xf32>
    %36 = vector.extract_strided_slice %1 {offsets = [0, 37], sizes = [4, 256], strides = [1, 1]} : vector<4x384xf32> to vector<4x256xf32>
    %c7 = arith.constant 7 : index
    %c0_23 = arith.constant 0 : index
    %c0_24 = arith.constant 0 : index
    %37 = vector.load %arg3[%c7, %c0_23, %c0_24] : memref<9x8x4xf32, #tpu.memory_space<vmem>>, vector<1x8x4xf32>
    %38 = vector.shape_cast %37 : vector<1x8x4xf32> to vector<8x4xf32>
    %cst_25 = arith.constant dense<0.000000e+00> : vector<8x256xf32>
    %39 = tpu.matmul %38, %36, %cst_25 {dimension_numbers = #tpu.dot_dimension_numbers<[1], [0], [0], [1], [0, 0, 1, 1], [], []>} : vector<8x4xf32>, vector<4x256xf32>, vector<8x256xf32> -> vector<8x256xf32>
    %40 = arith.addf %35, %39 : vector<8x256xf32>
    %41 = vector.extract_strided_slice %1 {offsets = [0, 38], sizes = [4, 256], strides = [1, 1]} : vector<4x384xf32> to vector<4x256xf32>
    %c8 = arith.constant 8 : index
    %c0_26 = arith.constant 0 : index
    %c0_27 = arith.constant 0 : index
    %42 = vector.load %arg3[%c8, %c0_26, %c0_27] : memref<9x8x4xf32, #tpu.memory_space<vmem>>, vector<1x8x4xf32>
    %43 = vector.shape_cast %42 : vector<1x8x4xf32> to vector<8x4xf32>
    %cst_28 = arith.constant dense<0.000000e+00> : vector<8x256xf32>
    %44 = tpu.matmul %43, %41, %cst_28 {dimension_numbers = #tpu.dot_dimension_numbers<[1], [0], [0], [1], [0, 0, 1, 1], [], []>} : vector<8x4xf32>, vector<4x256xf32>, vector<8x256xf32> -> vector<8x256xf32>
    %45 = arith.addf %40, %44 : vector<8x256xf32>
    %c0_i32 = arith.constant 0 : i32
    %46 = arith.cmpi eq, %arg0, %c0_i32 : i32
    %c0_i32_29 = arith.constant 0 : i32
    %47 = arith.cmpi eq, %arg1, %c0_i32_29 : i32
    %48 = arith.andi %46, %47 : i1
    %49 = arith.extui %48 : i1 to i32
    %c0_i32_30 = arith.constant 0 : i32
    %50 = arith.cmpi ne, %49, %c0_i32_30 : i32
    scf.if %50 {
      %cst_37 = arith.constant 0.000000e+00 : f32
      %62 = vector.broadcast %cst_37 : f32 to vector<8x1xf32>
      %c0_38 = arith.constant 0 : index
      %c0_39 = arith.constant 0 : index
      %63 = vector.load %arg8[%c0_38, %c0_39] : memref<8x1xf32, #tpu.memory_space<vmem>>, vector<8x1xf32>
      tpu.vector_store %arg8[%c0_38, %c0_39], %62 {strides = array<i32>} : memref<8x1xf32, #tpu.memory_space<vmem>>, vector<8x1xf32>,
      %cst_40 = arith.constant 0.000000e+00 : f32
      %64 = vector.broadcast %cst_40 : f32 to vector<8x1xf32>
      %c0_41 = arith.constant 0 : index
      %c0_42 = arith.constant 0 : index
      %65 = vector.load %arg9[%c0_41, %c0_42] : memref<8x1xf32, #tpu.memory_space<vmem>>, vector<8x1xf32>
      tpu.vector_store %arg9[%c0_41, %c0_42], %64 {strides = array<i32>} : memref<8x1xf32, #tpu.memory_space<vmem>>, vector<8x1xf32>,
    } else {
    }
    %c0_i32_31 = arith.constant 0 : i32
    %51 = arith.cmpi eq, %arg0, %c0_i32_31 : i32
    %52 = arith.extui %51 : i1 to i32
    %c0_i32_32 = arith.constant 0 : i32
    %53 = arith.cmpi ne, %52, %c0_i32_32 : i32
    scf.if %53 {
      %c0_37 = arith.constant 0 : index
      %c0_38 = arith.constant 0 : index
      %62 = vector.load %arg4[%c0_37, %c0_38] : memref<1x256xf32, #tpu.memory_space<vmem>>, vector<1x256xf32>
      %63 = vector.broadcast %62 : vector<1x256xf32> to vector<8x256xf32>
      %64 = arith.mulf %45, %63 : vector<8x256xf32>
      %c0_39 = arith.constant 0 : index
      %c0_40 = arith.constant 0 : index
      %65 = vector.load %arg8[%c0_39, %c0_40] : memref<8x1xf32, #tpu.memory_space<vmem>>, vector<8x1xf32>
      %cst_41 = arith.constant dense<0.000000e+00> : vector<8xf32>
      %66 = vector.multi_reduction <add>, %64, %cst_41 [1] : vector<8x256xf32> to vector<8xf32>
      %67 = vector.shape_cast %66 : vector<8xf32> to vector<8x1xf32>
      %68 = arith.addf %65, %67 : vector<8x1xf32>
      %c0_42 = arith.constant 0 : index
      %c0_43 = arith.constant 0 : index
      %69 = vector.load %arg8[%c0_42, %c0_43] : memref<8x1xf32, #tpu.memory_space<vmem>>, vector<8x1xf32>
      tpu.vector_store %arg8[%c0_42, %c0_43], %68 {strides = array<i32>} : memref<8x1xf32, #tpu.memory_space<vmem>>, vector<8x1xf32>,
      %c0_44 = arith.constant 0 : index
      %c0_45 = arith.constant 0 : index
      %70 = vector.load %arg9[%c0_44, %c0_45] : memref<8x1xf32, #tpu.memory_space<vmem>>, vector<8x1xf32>
      %71 = arith.mulf %64, %45 : vector<8x256xf32>
      %cst_46 = arith.constant dense<0.000000e+00> : vector<8xf32>
      %72 = vector.multi_reduction <add>, %71, %cst_46 [1] : vector<8x256xf32> to vector<8xf32>
      %73 = vector.shape_cast %72 : vector<8xf32> to vector<8x1xf32>
      %74 = arith.addf %70, %73 : vector<8x1xf32>
      %c0_47 = arith.constant 0 : index
      %c0_48 = arith.constant 0 : index
      %75 = vector.load %arg9[%c0_47, %c0_48] : memref<8x1xf32, #tpu.memory_space<vmem>>, vector<8x1xf32>
      tpu.vector_store %arg9[%c0_47, %c0_48], %74 {strides = array<i32>} : memref<8x1xf32, #tpu.memory_space<vmem>>, vector<8x1xf32>,
    } else {
    }
    %c1_i32 = arith.constant 1 : i32
    %54 = arith.cmpi eq, %arg0, %c1_i32 : i32
    %c0_i32_33 = arith.constant 0 : i32
    %55 = arith.cmpi eq, %arg1, %c0_i32_33 : i32
    %56 = arith.andi %54, %55 : i1
    %57 = arith.extui %56 : i1 to i32
    %c0_i32_34 = arith.constant 0 : i32
    %58 = arith.cmpi ne, %57, %c0_i32_34 : i32
    scf.if %58 {
      %c0_37 = arith.constant 0 : index
      %c0_38 = arith.constant 0 : index
      %62 = vector.load %arg8[%c0_37, %c0_38] : memref<8x1xf32, #tpu.memory_space<vmem>>, vector<8x1xf32>
      %cst_39 = arith.constant 0.001953125 : f32
      %63 = vector.broadcast %cst_39 : f32 to vector<8x1xf32>
      %64 = arith.mulf %62, %63 : vector<8x1xf32>
      %c0_40 = arith.constant 0 : index
      %c0_41 = arith.constant 0 : index
      %65 = vector.load %arg9[%c0_40, %c0_41] : memref<8x1xf32, #tpu.memory_space<vmem>>, vector<8x1xf32>
      %cst_42 = arith.constant 0.001953125 : f32
      %66 = vector.broadcast %cst_42 : f32 to vector<8x1xf32>
      %67 = arith.mulf %65, %66 : vector<8x1xf32>
      %68 = arith.mulf %64, %64 : vector<8x1xf32>
      %69 = arith.subf %67, %68 : vector<8x1xf32>
      %c0_43 = arith.constant 0 : index
      %c0_44 = arith.constant 0 : index
      %70 = vector.load %arg5[%c0_43, %c0_44] : memref<8x1xf32, #tpu.memory_space<vmem>>, vector<8x1xf32>
      %cst_45 = arith.constant 9.99999974E-6 : f32
      %71 = vector.broadcast %cst_45 : f32 to vector<8x1xf32>
      %72 = arith.addf %69, %71 : vector<8x1xf32>
      %73 = math.rsqrt %72 : vector<8x1xf32>
      %74 = arith.mulf %70, %73 : vector<8x1xf32>
      %c0_46 = arith.constant 0 : index
      %c0_47 = arith.constant 0 : index
      %75 = vector.load %arg10[%c0_46, %c0_47] : memref<8x1xf32, #tpu.memory_space<vmem>>, vector<8x1xf32>
      tpu.vector_store %arg10[%c0_46, %c0_47], %74 {strides = array<i32>} : memref<8x1xf32, #tpu.memory_space<vmem>>, vector<8x1xf32>,
      %c0_48 = arith.constant 0 : index
      %c0_49 = arith.constant 0 : index
      %76 = vector.load %arg6[%c0_48, %c0_49] : memref<8x1xf32, #tpu.memory_space<vmem>>, vector<8x1xf32>
      %77 = arith.mulf %64, %74 : vector<8x1xf32>
      %78 = arith.subf %76, %77 : vector<8x1xf32>
      %c0_50 = arith.constant 0 : index
      %c0_51 = arith.constant 0 : index
      %79 = vector.load %arg11[%c0_50, %c0_51] : memref<8x1xf32, #tpu.memory_space<vmem>>, vector<8x1xf32>
      tpu.vector_store %arg11[%c0_50, %c0_51], %78 {strides = array<i32>} : memref<8x1xf32, #tpu.memory_space<vmem>>, vector<8x1xf32>,
    } else {
    }
    %c1_i32_35 = arith.constant 1 : i32
    %59 = arith.cmpi eq, %arg0, %c1_i32_35 : i32
    %60 = arith.extui %59 : i1 to i32
    %c0_i32_36 = arith.constant 0 : i32
    %61 = arith.cmpi ne, %60, %c0_i32_36 : i32
    scf.if %61 {
      %c0_37 = arith.constant 0 : index
      %c0_38 = arith.constant 0 : index
      %62 = vector.load %arg10[%c0_37, %c0_38] : memref<8x1xf32, #tpu.memory_space<vmem>>, vector<8x1xf32>
      %63 = vector.broadcast %62 : vector<8x1xf32> to vector<8x256xf32>
      %64 = arith.mulf %45, %63 : vector<8x256xf32>
      %c0_39 = arith.constant 0 : index
      %c0_40 = arith.constant 0 : index
      %65 = vector.load %arg11[%c0_39, %c0_40] : memref<8x1xf32, #tpu.memory_space<vmem>>, vector<8x1xf32>
      %66 = vector.broadcast %65 : vector<8x1xf32> to vector<8x256xf32>
      %67 = arith.addf %64, %66 : vector<8x256xf32>
      %cst_41 = arith.constant 0.000000e+00 : f32
      %68 = vector.broadcast %cst_41 : f32 to vector<8x256xf32>
      %69 = arith.cmpf ogt, %67, %68 : vector<8x256xf32>
      %cst_42 = arith.constant 0.00999999977 : f32
      %70 = vector.broadcast %cst_42 : f32 to vector<8x256xf32>
      %71 = arith.mulf %70, %67 : vector<8x256xf32>
      %72 = arith.select %69, %67, %71 : vector<8x256xi1>, vector<8x256xf32>
      %c0_43 = arith.constant 0 : index
      %c0_44 = arith.constant 0 : index
      %73 = vector.load %arg7[%c0_43, %c0_44] : memref<8x256xf32, #tpu.memory_space<vmem>>, vector<8x256xf32>
      tpu.vector_store %arg7[%c0_43, %c0_44], %72 {strides = array<i32>} : memref<8x256xf32, #tpu.memory_space<vmem>>, vector<8x256xf32>,
    } else {
    }
    return
  }
  func.func @transform_0(%arg0: i32, %arg1: i32) -> (i32, i32, i32) {
    %c0_i32 = arith.constant 0 : i32
    %c0_i32_0 = arith.constant 0 : i32
    %c0_i32_1 = arith.constant 0 : i32
    return %arg1, %c0_i32, %c0_i32_0 : i32, i32, i32
  }
  func.func @transform_1(%arg0: i32, %arg1: i32) -> (i32, i32, i32) {
    %c0_i32 = arith.constant 0 : i32
    %c0_i32_0 = arith.constant 0 : i32
    %c0_i32_1 = arith.constant 0 : i32
    %c0_i32_2 = arith.constant 0 : i32
    return %c0_i32, %c0_i32_0, %c0_i32_1 : i32, i32, i32
  }
  func.func @transform_2(%arg0: i32, %arg1: i32) -> (i32, i32) {
    %c0_i32 = arith.constant 0 : i32
    %c0_i32_0 = arith.constant 0 : i32
    return %c0_i32, %arg1 : i32, i32
  }
  func.func @transform_3(%arg0: i32, %arg1: i32) -> (i32, i32) {
    %c0_i32 = arith.constant 0 : i32
    %c0_i32_0 = arith.constant 0 : i32
    %c0_i32_1 = arith.constant 0 : i32
    return %c0_i32, %c0_i32_0 : i32, i32
  }
  func.func @transform_4(%arg0: i32, %arg1: i32) -> (i32, i32) {
    %c0_i32 = arith.constant 0 : i32
    %c0_i32_0 = arith.constant 0 : i32
    %c0_i32_1 = arith.constant 0 : i32
    return %c0_i32, %c0_i32_0 : i32, i32
  }
  func.func @transform_5(%arg0: i32, %arg1: i32) -> (i32, i32) {
    %c0_i32 = arith.constant 0 : i32
    %0 = arith.cmpi eq, %arg0, %c0_i32 : i32
    %c3_i32 = arith.constant 3 : i32
    %1 = arith.select %0, %c3_i32, %arg1 : i32
    %c0_i32_0 = arith.constant 0 : i32
    %c0_i32_1 = arith.constant 0 : i32
    return %c0_i32_0, %1 : i32, i32
  }
}

</mosaic_0001>

<bundles_post_ra>
// kernel: tpu_custom_call.1
= control target key start
LH: loop header
LB: loop body
LE: loop exit
PB: predicated region body
PF: predicated region fallthrough
CT: control target
= control target key end

     0   :  { %10 = vsyncpa [#allocation7], 0  ;;  %s1825_s0 = inlined_call_operand.vmem [shape: f32[3,4,384], index: 0, kind: input, shape index: {}]   ;;  %s1826_s1 = inlined_call_operand.vmem [shape: f32[9,8,4], index: 1, kind: input, shape index: {}]   ;;  %s1827_s2 = inlined_call_operand.vmem [shape: f32[1,768], index: 2, kind: input, shape index: {}]   ;;  %s1828_s3 = inlined_call_operand.vmem [shape: f32[8,1], index: 3, kind: input, shape index: {}]   ;;  %s1829_s4 = inlined_call_operand.vmem [shape: f32[8,1], index: 4, kind: input, shape index: {}]   ;;  %s1830_s5 = inlined_call_operand.hbm [shape: f32[8,1024], index: 5, kind: output, shape index: {}]  }
   0x1   :  { %12 = vsyncpa [#allocation7 + $0x1], 0  ;;  %s1550_s18 = smov 0   ;;  %s1552_s19 = smov 0  }
   0x2   :  { %s1554_s20 = smov 0   ;;  %s1556_s21 = smov 0  }
   0x3   :  { %s1558_s22 = smov 0   ;;  %s1560_s23 = smov 0  }
   0x4   :  { %s1562_s24 = smov 0   ;;  %s1564_s25 = smov 0  }
   0x5 LB: > { %s1258_s26 = sadd.s32 4294967295, %s1506_s25   ;;  %s27_s27 = sadd.s32 1, %s1498_s23  ;;  %s1506_s25 = sphi %s1564_s25, %s18_s25   ;;  %s1502_s24 = sphi %s1562_s24, %s1839_s24   ;;  %s1498_s23 = sphi %s1560_s23, %s1838_s23   ;;  %s1494_s22 = sphi %s1558_s22, %s1837_s22   ;;  %s1490_s21 = sphi %s1556_s21, %s1836_s21   ;;  %s1486_s20 = sphi %s1554_s20, %s1835_s20   ;;  %s1482_s19 = sphi %s1552_s19, %s1834_s19   ;;  %s1478_s18 = sphi %s1550_s18, %s1833_s18  }
   0x6   : > { %s30_s28 = sadd.s32 1, %s1502_s24  ;;  %p28_p0 = scmp.ge.s32.totalorder %s27_s27, 3 }
   0x7   : > { %p149_p1 = scmp.eq.s32.totalorder %s1502_s24, 0  ;;  %s1259_s29 = sadd.s32 4294967294, %s1506_s25  }
   0x8   : > { %p166_p2 = scmp.ne.s32.totalorder %s1486_s20, %s1482_s19  ;;  %s1841_s27 = smov (%p28_p0, %s27_s27), 0 }
   0x9   : > { %s1843_s28 = smov (!%p28_p0, %s30_s28), %s1502_s24  ;;  %p167_p4 = scmp.eq.s32.totalorder %s1258_s26, 5 }
   0xa   : > { %s150_s30 = scalar_select %p149_p1, 3, %s1498_s23 }
   0xb   : > { %p32_p3 = scmp.ge.s32.totalorder %s1843_s28, 2  ;;  %p172_p5 = scmp.ne.s32.totalorder %s1482_s19, %s1478_s18 }
   0xc   : > { %p173_p6 = scmp.eq.s32.totalorder %s1259_s29, 5  ;;  %p1605_p7 = por %p167_p4, %p166_p2 }
   0xd   : > { %s1845_s28 = smov (%p32_p3, %s1843_s28), 0  ;;  %p1262_p10 = scmp.ge.s32.totalorder %s1506_s25, 1 }
   0xe   : > { %p1609_p8 = por %p173_p6, %p172_p5  ;;  %p151_p9 = scmp.eq.s32.totalorder %s1845_s28, 0 }
   0xf   : > { %p216_p11 = scmp.lt.s32.totalorder %s1506_s25, 7  ;;  %s156_s10 = sadd.s32 1, %s1486_s20 }
  0x10   : > { %s152_s8 = scalar_select %p151_p9, 3, %s1841_s27 }
  0x11   : > { %p217_p12 = pnand %p1262_p10, %p216_p11 }
  0x12   : > { %s153_s9 = ssub.s32 %s150_s30, %s152_s8  ;;  %p248_p0 = scmp.lt.s32.totalorder (!%p217_p12), %s1490_s21, 2  ;;  %v1509_v3 = vmov (!%p217_p12), 0.0   ;;  %vm275_vm0 = vcmask (!%p217_p12), 1039360   ;;  %vm282_vm1 = vcmask (!%p217_p12), 1043456   ;;  %vm626_vm2 = vcmask (!%p217_p12), 891904   ;;  %v1281_v13 = vld [vmem:[%s1826_s1 + $0x20] sm:$0xff] (!%p217_p12) }
  0x13   : > { %p154_p13 = scmp.eq.s32.totalorder %s153_s9, 0  ;;  %220 = sbr.rel (%p217_p12) target bundleno = 766 (0x2fe), region = 40  ;;  %700 = vmatprep.mubr.f32.mxu0 (!%p217_p12), %v1509_v3  ;;  %351 = vmatprep.mubr.f32.mxu1 (!%p217_p12), %v1509_v3  ;;  %vm278_vm3 = vcmask (!%p217_p12), 31744   ;;  %vm717_vm4 = vcmask (!%p217_p12), 883712   ;;  %v1266_v16 = vld [vmem:[%s1826_s1 + $0x8] sm:$0xff] (!%p217_p12)  ;;  %vm808_vm5 = vcmask (!%p217_p12), 752640  }
  0x14   : > { %s245_s17 = sand.u32 (!%p217_p12), 1, %s1482_s19   ;;  %s1265_s29 = sshll.u32 (!%p217_p12), %s1490_s21, 1  ;;  %v1285_v22 = vld [vmem:[%s1826_s1 + $0x28] sm:$0xff] (!%p217_p12)  ;;  %v263_v25 = vld [vmem:[%s1826_s1] sm:$0xff] (!%p217_p12)  ;;  %vm444_vm6 = vcmask (!%p217_p12), 1031168   ;;  %v1289_v31 = vld [vmem:[%s1826_s1 + $0x30] sm:$0xff] (!%p217_p12) }
  0x15   : > { %s1619_s11 = scalar_select %p154_p13, %s1486_s20, %s156_s10  }
  0x16   : > { %s1631_s26 = sshll.u32 (!%p217_p12), %s245_s17, 4  ;;  %s1508_s30 = smov (!%p217_p12), 109   ;;  %vm899_vm7 = vcmask (!%p217_p12), 744448   ;;  %v1273_v37 = vld [vmem:[%s1826_s1 + $0x10] sm:$0xff] (!%p217_p12)  ;;  %v1293_v40 = vld [vmem:[%s1826_s1 + $0x38] sm:$0xff] (!%p217_p12)  ;;  %vm535_vm8 = vcmask (!%p217_p12), 900096  }
  0x17   : > { %p254_p1 = scmp.lt.s32.totalorder (!%p217_p12), %s1265_s29, 5  ;;  %s1510_s8 = smov (!%p217_p12), 127   ;;  %vm990_vm9 = vcmask (!%p217_p12), 736256   ;;  %v1277_v49 = vld [vmem:[%s1826_s1 + $0x18] sm:$0xff] (!%p217_p12)  ;;  %v1297_v50 = vld [vmem:[%s1826_s1 + $0x40] sm:$0xff] (!%p217_p12) }
  0x18   : > { %s1512_s14 = smov (!%p217_p12), 92   ;;  %s1513_s15 = smov (!%p217_p12), 126  }
  0x19   : > { %p1073_p2 = scmp.eq.s32.totalorder (!%p217_p12), %s1494_s22, 0  ;;  %p1074_p3 = scmp.eq.s32.totalorder (!%p217_p12), %s1490_s21, 0 }
  0x1a   : > { %s249_s12 = scalar_select %p248_p0, %s1490_s21, 2 }
  0x1b   : > { %s1847_s29 = smov (!%p254_p1, %s1265_s29), 5  ;;  %p1075_p4 = pnand %p1074_p3, %p1073_p2 }
  0x1c   : > { %s1325_s13 = smul.u32 12, %s249_s12  ;;  %s256_s12 = scalar_lea.vmem %s1827_s2, %s1847_s29  ;;  %vm1079_vm10 = vcmask (!%p1075_p4), 7168   ;;  %v1517_v59 = vmov (!%p1075_p4), 0.0  }
  0x1d   : > { %1080 = vst.msk [vmem:[#allocation2] sm:$0xff] (!%p1075_p4), %vm1079_vm10, %v1517_v59  ;;  %1081 = vst.msk [vmem:[#allocation3] sm:$0xff] (!%p1075_p4), %vm1079_vm10, %v1517_v59 }
  0x1e   : > { %s252_s16 = scalar_lea.vmem %s1825_s0, %s1325_s13  ;;  %s1511_s13 = smov 108  }
  0x1f   : > { %v262_v0 = vld [vmem:[%s252_s16 + $0x8] sm:$0xf]  ;;  %v1627_v1 = vld [vmem:[%s252_s16] sm:$0xff]  ;;  %s1514_s16 = smov 91  }
  0x20   : > { %624 = vrot.lane.b32.xlu0 %v262_v0, %s1508_s30  ;;  %620 = vrot.lane.b32.xlu1 %v1627_v1, %s1508_s30  ;;  %v1637_v2 = vcombine.high %v1627_v1, %v1627_v1 }
  0x24   : > { %273 = vrot.lane.b32.xlu0 %v262_v0, %s1510_s8  ;;  %271 = vrot.lane.b32.xlu1 %v1637_v2, %s1510_s8 }
  0x28   : > { %713 = vrot.lane.b32.xlu1 %v1637_v2, %s1511_s13  ;;  %622 = vrot.lane.b32.xlu0 %v1637_v2, %s1508_s30  ;;  %s1515_s30 = smov 110  }
  0x2c   : > { %269 = vrot.lane.b32.xlu1 %v1627_v1, %s1510_s8  ;;  %715 = vrot.lane.b32.xlu0 %v262_v0, %s1511_s13  ;;  %s1516_s8 = smov 90  }
  0x30   : > { %804 = vrot.lane.b32.xlu1 %v1637_v2, %s1512_s14  ;;  %711 = vrot.lane.b32.xlu0 %v1627_v1, %s1511_s13  ;;  %s1744_s13 = scalar_lea.vmem [#allocation6], %s1631_s26 }
  0x34   : > { %802 = vrot.lane.b32.xlu1 %v1627_v1, %s1512_s14  ;;  %806 = vrot.lane.b32.xlu0 %v262_v0, %s1512_s14 }
  0x38   : > { %442 = vrot.lane.b32.xlu1 %v262_v0, %s1513_s15  ;;  %440 = vrot.lane.b32.xlu0 %v1637_v2, %s1513_s15 }
  0x3c   : > { %897 = vrot.lane.b32.xlu1 %v262_v0, %s1514_s16  ;;  %895 = vrot.lane.b32.xlu0 %v1637_v2, %s1514_s16 }
  0x40   : > { %893 = vrot.lane.b32.xlu1 %v1627_v1, %s1514_s16  ;;  %438 = vrot.lane.b32.xlu0 %v1627_v1, %s1513_s15 }
  0x44   : > { %533 = vrot.lane.b32.xlu1 %v262_v0, %s1515_s30  ;;  %531 = vrot.lane.b32.xlu0 %v1637_v2, %s1515_s30 }
  0x48   : > { %988 = vrot.lane.b32.xlu1 %v262_v0, %s1516_s8  ;;  %986 = vrot.lane.b32.xlu0 %v1637_v2, %s1516_s8 }
  0x4c   : > { %984 = vrot.lane.b32.xlu1 %v1627_v1, %s1516_s8  ;;  %529 = vrot.lane.b32.xlu0 %v1627_v1, %s1515_s30 }
  0x92   : > { %v625_v4 = vpop.permute.xlu0 %624  ;;  %v621_v5 = vpop.permute.xlu1 %620 }
  0x96   : > { %v274_v6 = vpop.permute.xlu0 %273  ;;  %v272_v7 = vpop.permute.xlu1 %271 }
  0x97   : > { %v277_v8 = vsel %vm275_vm0, %v272_v7, %v274_v6 }
  0x98   : > { %1267 = vmatprep.subr.msk.mxu1 %vm282_vm1, %v277_v8 }
  0x9a   : > { %v714_v9 = vpop.permute.xlu1 %713  ;;  %v623_v10 = vpop.permute.xlu0 %622 }
  0x9b   : > { %v628_v11 = vsel %vm626_vm2, %v623_v10, %v625_v4  ;;  %v627_v12 = vsel %vm626_vm2, %v621_v5, %v623_v10 }
  0x9c   : > { %1282 = vmatprep.subr.msk.mxu0 %vm282_vm1, %v628_v11 }
  0x9d   : > { %1283 = vmatpush1.msk.msra.mxu0 %vm282_vm1, %v627_v12 }
  0x9e   : > { %v270_v14 = vpop.permute.xlu1 %269  ;;  %v716_v15 = vpop.permute.xlu0 %715  ;;  %1284 = vmatmul.mubr.msk.f32.vlgmr.msra.gmra.mrb[0].mxu0 %vm278_vm3, %v1281_v13 }
  0x9f   : > { %v719_v17 = vsel %vm717_vm4, %v714_v9, %v716_v15  ;;  %v276_v18 = vsel %vm275_vm0, %v270_v14, %v272_v7  ;;  %791 = vmatprep.mubr.f32.mxu0 %v1509_v3 }
  0xa0   : > { %1268 = vmatpush1.msk.msra.mxu1 %vm282_vm1, %v276_v18  ;;  %1286 = vmatprep.subr.msk.mxu0 %vm282_vm1, %v719_v17 }
  0xa1   : > { %1269 = vmatmul.mubr.msk.f32.vlgmr.msra.gmra.mrb[0].mxu1 %vm278_vm3, %v1266_v16  ;;  %1270 = vmatprep.subr.msk.mxu1 %vm282_vm1, %v1637_v2 }
  0xa2   : > { %v805_v19 = vpop.permute.xlu1 %804  ;;  %v712_v20 = vpop.permute.xlu0 %711  ;;  %1271 = vmatpush1.msk.msra.mxu1 %vm282_vm1, %v1627_v1  ;;  %429 = vmatprep.mubr.f32.mxu1 %v1509_v3 }
  0xa3   : > { %v718_v21 = vsel %vm717_vm4, %v712_v20, %v714_v9 }
  0xa4   : > { %1287 = vmatpush1.msk.msra.mxu0 %vm282_vm1, %v718_v21 }
  0xa6   : > { %v803_v23 = vpop.permute.xlu1 %802  ;;  %v807_v24 = vpop.permute.xlu0 %806  ;;  %1288 = vmatmul.mubr.msk.f32.vlgmr.msra.gmra.mrb[0].mxu0 %vm278_vm3, %v1285_v22 }
  0xa7   : > { %v809_v26 = vsel %vm808_vm5, %v803_v23, %v805_v19  ;;  %v810_v27 = vsel %vm808_vm5, %v805_v19, %v807_v24  ;;  %882 = vmatprep.mubr.f32.mxu0 %v1509_v3 }
  0xa8   : > { %1290 = vmatprep.subr.msk.mxu0 %vm282_vm1, %v810_v27 }
  0xa9   : > { %1291 = vmatpush1.msk.msra.mxu0 %vm282_vm1, %v809_v26  ;;  %1272 = vmatmul.mubr.msk.f32.vlgmr.msra.gmra.mrb[0].mxu1 %vm278_vm3, %v263_v25 }
  0xaa   : > { %v443_v28 = vpop.permute.xlu1 %442  ;;  %v441_v29 = vpop.permute.xlu0 %440  ;;  %518 = vmatprep.mubr.f32.mxu1 %v1509_v3 }
  0xab   : > { %v446_v30 = vsel %vm444_vm6, %v441_v29, %v443_v28 }
  0xac   : > { %1274 = vmatprep.subr.msk.mxu1 %vm282_vm1, %v446_v30 }
  0xae   : > { %v898_v32 = vpop.permute.xlu1 %897  ;;  %v896_v33 = vpop.permute.xlu0 %895  ;;  %1292 = vmatmul.mubr.msk.f32.vlgmr.msra.gmra.mrb[0].mxu0 %vm278_vm3, %v1289_v31 }
  0xaf   : > { %v901_v34 = vsel %vm899_vm7, %v896_v33, %v898_v32  ;;  %973 = vmatprep.mubr.f32.mxu0 %v1509_v3 }
  0xb0   : > { %1294 = vmatprep.subr.msk.mxu0 %vm282_vm1, %v901_v34 }
  0xb2   : > { %v894_v35 = vpop.permute.xlu1 %893  ;;  %v439_v36 = vpop.permute.xlu0 %438 }
  0xb3   : > { %v900_v38 = vsel %vm899_vm7, %v894_v35, %v896_v33  ;;  %v445_v39 = vsel %vm444_vm6, %v439_v36, %v441_v29 }
  0xb4   : > { %1275 = vmatpush1.msk.msra.mxu1 %vm282_vm1, %v445_v39  ;;  %1295 = vmatpush1.msk.msra.mxu0 %vm282_vm1, %v900_v38 }
  0xb5   : > { %1276 = vmatmul.mubr.msk.f32.vlgmr.msra.gmra.mrb[0].mxu1 %vm278_vm3, %v1273_v37 }
  0xb6   : > { %v534_v41 = vpop.permute.xlu1 %533  ;;  %v532_v42 = vpop.permute.xlu0 %531  ;;  %1296 = vmatmul.mubr.msk.f32.vlgmr.msra.gmra.mrb[0].mxu0 %vm278_vm3, %v1293_v40  ;;  %609 = vmatprep.mubr.f32.mxu1 %v1509_v3 }
  0xb7   : > { %v537_v43 = vsel %vm535_vm8, %v532_v42, %v534_v41  ;;  %1064 = vmatprep.mubr.f32.mxu0 %v1509_v3 }
  0xb8   : > { %1278 = vmatprep.subr.msk.mxu1 %vm282_vm1, %v537_v43 }
  0xba   : > { %v989_v44 = vpop.permute.xlu1 %988  ;;  %v987_v45 = vpop.permute.xlu0 %986 }
  0xbb   : > { %v992_v46 = vsel %vm990_vm9, %v987_v45, %v989_v44 }
  0xbc   : > { %1298 = vmatprep.subr.msk.mxu0 %vm282_vm1, %v992_v46 }
  0xbe   : > { %v985_v47 = vpop.permute.xlu1 %984  ;;  %v530_v48 = vpop.permute.xlu0 %529 }
  0xbf   : > { %v991_v51 = vsel %vm990_vm9, %v985_v47, %v987_v45  ;;  %v536_v52 = vsel %vm535_vm8, %v530_v48, %v532_v42 }
  0xc0   : > { %1279 = vmatpush1.msk.msra.mxu1 %vm282_vm1, %v536_v52  ;;  %1299 = vmatpush1.msk.msra.mxu0 %vm282_vm1, %v991_v51 }
  0xc1   : > { %1280 = vmatmul.mubr.msk.f32.vlgmr.msra.gmra.mrb[0].mxu1 %vm278_vm3, %v1277_v49  ;;  %1300 = vmatmul.mubr.msk.f32.vlgmr.msra.gmra.mrb[0].mxu0 %vm278_vm3, %v1297_v50 }
 0x190   : > { %1078 = sbr.rel (%p1075_p4) target bundleno = 407 (0x197), region = 44 }
 0x194   : > { %v611_v53 = vpop.f32.mrb[0].mxu1  ;;  %v1066_v54 = vpop.f32.mrb[0].mxu0 }
 0x195   : > { %v1739_v55 = vadd.f32 %v1066_v54, %v611_v53  ;;  %v613_v56 = vpop.f32.mrb[1].mxu1  ;;  %v1068_v57 = vpop.f32.mrb[1].mxu0 }
 0x196   : > { %v1741_v58 = vadd.f32 %v1068_v57, %v613_v56 }
 0x197 PF: > { %p1301_p5 = scmp.ne.s32.totalorder %s1494_s22, 0 }
 0x198   : > { %v1087_v60 = vlaneseq (!%p1301_p5)  ;;  %v1085_v62 = vld [vmem:[%s256_s12] sm:$0x3] (!%p1301_p5)  ;;  %vm1104_vm11 = vcmask (!%p1301_p5), 7168   ;;  %v1106_v12 = vld [vmem:[#allocation3] sm:$0xff] (!%p1301_p5) }
 0x199   : > { %1084 = sbr.rel (%p1301_p5) target bundleno = 569 (0x239), region = 48  ;;  %v1099_v9 = vld [vmem:[#allocation2] sm:$0xff] (!%p1301_p5) }
 0x19a   : > { %v1088_v61 = vshrl.u32 (!%p1301_p5), %v1087_v60, 7 }
 0x19c   : > { %v1089_v63 = vsub.s32 (!%p1301_p5), 0, %v1088_v61  ;;  %v1093_v0 = vsub.s32 (!%p1301_p5), 1, %v1088_v61 }
 0x19e   : > { %v1090_v1 = vrot.slane (!%p1301_p5), %v1085_v62, %v1089_v63  ;;  %v1094_v2 = vrot.slane (!%p1301_p5), %v1085_v62, %v1093_v0 }
 0x1a0   : > { %v1097_v3 = vmul.f32 %v1739_v55, %v1090_v1  ;;  %v1098_v4 = vmul.f32 %v1741_v58, %v1094_v2 }
 0x1a2   : > { %v1100_v5 = vadd.f32 %v1098_v4, %v1097_v3  ;;  %v1107_v6 = vmul.f32 %v1739_v55, %v1097_v3  ;;  %v1108_v7 = vmul.f32 %v1741_v58, %v1098_v4 }
 0x1a4   : > { %1101 = vadd.xlane.f32.xlu0 %v1100_v5  ;;  %v1109_v8 = vadd.f32 %v1108_v7, %v1107_v6 }
 0x1a8   : > { %1110 = vadd.xlane.f32.xlu0 %v1109_v8 }
 0x231   : > { %v1102_v10 = vpop.xlane.xlu0 %1101 }
 0x232   : > { %v1103_v11 = vadd.f32 %v1102_v10, %v1099_v9 }
 0x234   : > { %1105 = vst.msk [vmem:[#allocation2] sm:$0xff] %vm1104_vm11, %v1103_v11 }
 0x235   : > { %v1111_v13 = vpop.xlane.xlu0 %1110 }
 0x236   : > { %v1112_v14 = vadd.f32 %v1111_v13, %v1106_v12 }
 0x238   : > { %1113 = vst.msk [vmem:[#allocation3] sm:$0xff] %vm1104_vm11, %v1112_v14 }
 0x239 PF: > { %p1114_p6 = scmp.eq.s32.totalorder %s1494_s22, 1 }
 0x23b   : > { %p1115_p9 = pnand %p1114_p6, %p1074_p3 }
 0x23c   : > { %v1119_v15 = vld [vmem:[#allocation2] sm:$0xff] (!%p1115_p9)  ;;  %vm1129_vm12 = vcmask (!%p1115_p9), 7168  }
 0x23d   : > { %1118 = sbr.rel (%p1115_p9) target bundleno = 600 (0x258), region = 52  ;;  %v1120_v17 = vmul.f32 (!%p1115_p9), 0.001953125, %v1119_v15  ;;  %v1125_v22 = vld [vmem:[%s1828_s3] sm:$0xff] (!%p1115_p9) }
 0x23e   : > { %v1131_v25 = vld [vmem:[%s1829_s4] sm:$0xff] (!%p1115_p9) }
 0x23f   : > { %v1121_v16 = vld [vmem:[#allocation3] sm:$0xff] (!%p1115_p9)  ;;  %v1123_v19 = vmul.f32 (!%p1115_p9), %v1120_v17, %v1120_v17 }
 0x240   : > { %v1122_v18 = vmul.f32 (!%p1115_p9), 0.001953125, %v1121_v16 }
 0x242   : > { %v1124_v20 = vsub.f32 (!%p1115_p9), %v1122_v18, %v1123_v19 }
 0x244   : > { %v1126_v21 = vadd.f32 1e-05, %v1124_v20 }
 0x246   : > { %1409 = vrsqrt.f32 %v1126_v21 }
 0x250   : > { %v1410_v23 = vpop.eup %1409 }
 0x251   : > { %v1128_v24 = vmul.f32 %v1410_v23, %v1125_v22 }
 0x253   : > { %1130 = vst.msk [vmem:[#allocation4] sm:$0xff] %vm1129_vm12, %v1128_v24  ;;  %v1132_v26 = vmul.f32 %v1128_v24, %v1120_v17 }
 0x255   : > { %v1133_v27 = vsub.f32 %v1131_v25, %v1132_v26 }
 0x257   : > { %1134 = vst.msk [vmem:[#allocation5] sm:$0xff] %vm1129_vm12, %v1133_v27 }
 0x258 PF: > { %p1302_p10 = scmp.ne.s32.totalorder %s1494_s22, 1 }
 0x259   : > { %v1518_v29 = vmov (!%p1302_p10), 0  }
 0x25a   : > { %1137 = sbr.rel (%p1302_p10) target bundleno = 741 (0x2e5), region = 56  ;;  %v1138_v28 = vld [vmem:[#allocation4] sm:$0xff] (!%p1302_p10)  ;;  %1411 = vset.pattern.permute.xlu0 (!%p1302_p10), %v1518_v29 }
 0x25b   : > { %1141 = vperm.xlu0 (!%p1302_p10), %1411, %v1138_v28  }
 0x25e   : > { %v1146_v30 = vld [vmem:[#allocation5] sm:$0xff] (!%p1302_p10) }
 0x25f   : > { %1149 = vperm.xlu0 (!%p1302_p10), %1411, %v1146_v30  }
 0x2da   : > { %v1142_v31 = vpop.permute.xlu0 %1141 }
 0x2db   : > { %v1144_v32 = vmul.f32 %v1739_v55, %v1142_v31  ;;  %v1145_v33 = vmul.f32 %v1741_v58, %v1142_v31 }
 0x2de   : > { %v1150_v34 = vpop.permute.xlu0 %1149 }
 0x2df   : > { %v1152_v35 = vadd.f32 %v1150_v34, %v1144_v32  ;;  %v1153_v36 = vadd.f32 %v1150_v34, %v1145_v33 }
 0x2e1   : > { %vm1154_vm13 = vcmp.gt.f32.partialorder %v1152_v35, 0.0  ;;  %vm1155_vm14 = vcmp.gt.f32.partialorder %v1153_v36, 0.0  ;;  %v1156_v37 = vmul.f32 0.01, %v1152_v35  ;;  %v1157_v38 = vmul.f32 0.01, %v1153_v36 }
 0x2e3   : > { %v1158_v39 = vsel %vm1154_vm13, %v1152_v35, %v1156_v37  ;;  %v1159_v40 = vsel %vm1155_vm14, %v1153_v36, %v1157_v38 }
 0x2e4   : > { %1160 = vst [vmem:[%s1744_s13] sm:$0xff] %v1158_v39  ;;  %1161 = vst [vmem:[%s1744_s13 + $0x8] sm:$0xff] %v1159_v40 }
 0x2e5 PF: > { %s1179_s30 = sshll.u32 %s1744_s13, 4  ;;  %s1849_s21 = smov (%p1073_p2, %s1490_s21), 3  ;;  %s1774_s30 = int_to_ptr.vmem [resolvable:$true] %s1179_s30 }
 0x2e6   : > { %s1308_s8 = sshll.u32 %s1849_s21, 8  ;;  %s1163_s15 = scalar_lea.sflag [#allocation7], %s245_s17 }
 0x2e7   : > { %s1177_s14 = scalar_lea.hbm %s1830_s5, %s1308_s8  ;;  %s1412_s26 = scalar_lea.vmem %s1774_s30, 256 }
 0x2e8   : > { %p1413_p11 = scmp.ne.s32.totalorder %s1774_s30, %s1412_s26  ;;  %s1519_s13 = smov [#allocation6]  }
 0x2e9   : > { %s1416_s22 = sshll.u32 %s1519_s13, 4  ;;  %s1417_s22 = int_to_ptr.vmem [resolvable:$false] %s1416_s22 }
 0x2ea   : > { %p1414_p12 = pnand %p1413_p11, %p1605_p7  ;;  %s1418_s29 = scalar_lea.vmem %s1417_s22, 512 }
 0x2eb   : > { %p1419_p0 = scmp.lt.s32.totalorder %s1774_s30, %s1417_s22  ;;  %p1420_p1 = scmp.lt.s32.totalorder %s1418_s29, %s1412_s26 }
 0x2ec   : > { %p1415_p13 = pneg %p1414_p12 }
 0x2ed   : > { %p1421_p2 = por %p1420_p1, %p1419_p0 }
 0x2ef   : > { %p1422_p3 = pnand %p1421_p2, %p1415_p13 }
 0x2f1   : > { %1425 = shalt.err (!%p1422_p3)
}
 0x2f2   : > { %s1426_s21 = scalar_lea.hbm %s1177_s14, 256  ;;  %s1430_s16 = scalar_lea.hbm %s1830_s5, 1024 }
 0x2f3   : > { %p1427_p4 = scmp.ne.s32.totalorder %s1177_s14, %s1426_s21  ;;  %p1431_p9 = scmp.lt.u32.totalorder %s1177_s14, %s1830_s5 }
 0x2f4   : > { %p1432_p10 = scmp.lt.u32.totalorder %s1430_s16, %s1426_s21  ;;  %p1434_p12 = scmp.lt.u32.totalorder %s1426_s21, %s1177_s14 }
 0x2f5   : > { %p1428_p5 = pnand %p1427_p4, %p1605_p7 }
 0x2f6   : > { %p1433_p11 = por %p1432_p10, %p1431_p9 }
 0x2f7   : > { %p1429_p6 = pneg %p1428_p5 }
 0x2f8   : > { %p1435_p0 = por %p1434_p12, %p1433_p11 }
 0x2fa   : > { %p1436_p13 = pnand %p1435_p0, %p1429_p6 }
 0x2fc   : > { %1439 = shalt.err (!%p1436_p13)
}
 0x2fd   : > { %1326 = dma.vmem_to_hbm [thread:$0]  (%p1605_p7), %s1774_s30, 256, %s1177_s14, %s1163_s15  }
 0x2fe PF: > { %p1332_p1 = scmp.ge.s32.totalorder %s1506_s25, 2  ;;  %s1191_s10 = sand.u32 1, %s1478_s18  }
 0x2ff   : > { %s1192_s26 = scalar_lea.sflag [#allocation7], %s1191_s10 }
 0x300   : > { %p1329_p2 = pnand %p1332_p1, %p1609_p8 }
 0x302   : > { %1473 = dma.done.wait (!%p1329_p2), %s1192_s26, 256  }
 0x303   : > { %1475 = vsyncadd (!%p1329_p2), %s1192_s26, 4294967040  ;;  %s18_s25 = sadd.s32 1, %s1506_s25   ;;  %s1833_s18 = smov %s1482_s19 }
 0x304   : > { %p15_p3 = scmp.ge.s32.totalorder %s18_s25, 8   ;;  %s1834_s19 = smov %s1486_s20 }
 0x305   : > { %s1835_s20 = smov %s1619_s11  ;;  %s1836_s21 = smov %s1498_s23 }
 0x306   : > { %s1837_s22 = smov %s1502_s24  ;;  %s1838_s23 = smov %s1841_s27 }
 0x307   : > { %s1839_s24 = smov %s1845_s28  ;;  %17 = sbr.rel (!%p15_p3) target bundleno = 5 (0x5), region = 102 }
 0x30e   :  { %1197 = vsyncpa [#allocation7], 1 }
 0x30f   :  { %1199 = vsyncpa [#allocation7 + $0x1], 1 }

</bundles_post_ra>
